<compile_context>
chip_gen: v6e
topology: v6e:2x2x1
jax: 0.10.0
libtpu: 0.0.40
codegen_flags: <defaults>
</compile_context>

<pallas_src>
import functools

import numpy as np
import jax
import jax.numpy as jnp
from jax.experimental import pallas as pl
from jax.experimental.pallas import tpu as pltpu


_BIG = 1.0e30          # "empty segment" sentinel, far above any real coordinate
_OUT_LANES = 128       # lane-dense packed output width of kernel 1


def _ceil_to(x, m):
    return ((x + m - 1) // m) * m


# ----------------------------------------------------------------------------
# Kernel 1: tiled segmented bbox min/max + params + corners + sigmoid/mask
# ----------------------------------------------------------------------------
def _bbox_kernel(locs_ref, scores_ref, coeff_ref, out_ref,
                 xmin_s, xmax_s, ymin_s, ymax_s, zmin_s, zmax_s,
                 *, p_tile, m_tile, score_thre):
    p = pl.program_id(0)
    m = pl.program_id(1)
    n_m = pl.num_programs(1)

    @pl.when(m == 0)
    def _init():
        big = jnp.full((p_tile, 128), _BIG, jnp.float32)
        xmin_s[...] = big
        ymin_s[...] = big
        zmin_s[...] = big
        xmax_s[...] = -big
        ymax_s[...] = -big
        zmax_s[...] = -big

    pid = p * p_tile + jax.lax.broadcasted_iota(jnp.int32, (p_tile, 1), 0)

    # Register-carried 128-lane-wide accumulators: per-point reduce work stays
    # on the VALU; scratch is touched once per grid step (6 loads + 6 stores).
    xmin, xmax = xmin_s[...], xmax_s[...]
    ymin, ymax = ymin_s[...], ymax_s[...]
    zmin, zmax = zmin_s[...], zmax_s[...]

    n_chunks = m_tile // 128
    for c in range(n_chunks):
        sl = slice(c * 128, (c + 1) * 128)
        # Segment ids ride bit-cast in row 3 of the coord slab (single stream).
        seg = pltpu.bitcast(locs_ref[3:4, sl], jnp.int32)       # (1, 128)
        valid = seg == pid                                      # (p_tile, 128)
        x = locs_ref[0:1, sl]
        y = locs_ref[1:2, sl]
        z = locs_ref[2:3, sl]
        xmin = jnp.minimum(xmin, jnp.where(valid, x, _BIG))
        xmax = jnp.maximum(xmax, jnp.where(valid, x, -_BIG))
        ymin = jnp.minimum(ymin, jnp.where(valid, y, _BIG))
        ymax = jnp.maximum(ymax, jnp.where(valid, y, -_BIG))
        zmin = jnp.minimum(zmin, jnp.where(valid, z, _BIG))
        zmax = jnp.maximum(zmax, jnp.where(valid, z, -_BIG))

    xmin_s[...], xmax_s[...] = xmin, xmax
    ymin_s[...], ymax_s[...] = ymin, ymax
    zmin_s[...], zmax_s[...] = zmin, zmax

    @pl.when(m == n_m - 1)
    def _finalize():
        # Single cross-lane (XLU) reduce per coordinate per p tile.
        xmn = jnp.min(xmin, axis=1, keepdims=True)
        xmx = jnp.max(xmax, axis=1, keepdims=True)
        ymn = jnp.min(ymin, axis=1, keepdims=True)
        ymx = jnp.max(ymax, axis=1, keepdims=True)
        zmn = jnp.min(zmin, axis=1, keepdims=True)
        zmx = jnp.max(zmax, axis=1, keepdims=True)
        # Emptiness derived from the min sentinel (no extra mask reduction).
        has = xmn < (_BIG * 0.5)

        cx = jnp.where(has, (xmn + xmx) * 0.5, 0.0)
        cy = jnp.where(has, (ymn + ymx) * 0.5, 0.0)
        cz = jnp.where(has, (zmn + zmx) * 0.5, 0.0)
        dx = jnp.where(has, xmx - xmn, 0.0)
        dy = jnp.where(has, ymx - ymn, 0.0)
        dz = jnp.where(has, zmx - zmn, 0.0)

        sig = jax.nn.sigmoid(scores_ref[...])                   # (p_tile, 1)
        msk = (sig > score_thre).astype(jnp.float32)

        cm = coeff_ref[...]                                     # (8, 128)
        out_ref[...] = (cx * cm[0:1, :] + cy * cm[1:2, :] + cz * cm[2:3, :]
                        + dx * cm[3:4, :] + dy * cm[4:5, :] + dz * cm[5:6, :]
                        + sig * cm[6:7, :] + msk * cm[7:8, :])


def _run_bbox_kernel(locs_cm, scores_col, coeff, ppad, p_tile, m_tile, score_thre):
    mpad = locs_cm.shape[1]
    grid = (ppad // p_tile, mpad // m_tile)
    kernel = functools.partial(_bbox_kernel, p_tile=p_tile, m_tile=m_tile,
                               score_thre=score_thre)
    return pl.pallas_call(
        kernel,
        out_shape=jax.ShapeDtypeStruct((ppad, _OUT_LANES), jnp.float32),
        grid=grid,
        in_specs=[
            pl.BlockSpec((8, m_tile), lambda p, m: (0, m)),       # coords + seg row
            pl.BlockSpec((p_tile, 1), lambda p, m: (p, 0)),       # scores
            pl.BlockSpec((8, _OUT_LANES), lambda p, m: (0, 0)),   # corner coefficients
        ],
        out_specs=pl.BlockSpec((p_tile, _OUT_LANES), lambda p, m: (p, 0)),
        scratch_shapes=[pltpu.VMEM((p_tile, 128), jnp.float32) for _ in range(6)],
        compiler_params=pltpu.CompilerParams(
            dimension_semantics=("parallel", "arbitrary"),
            vmem_limit_bytes=32 * 1024 * 1024),
    )(locs_cm, scores_col, coeff)


def _build_corner_coeff():
    # get_3d_box_batch corner convention with heading_angle == 0 (VoteNet
    # box_util): l = size[0] (dx) on x, h = size[2] (dz) on y, w = size[1] (dy)
    # on z.
    # TODO(synk): verify corner axis convention against the external
    #             get_3d_box_batch used by the reference Scan2Cap code.
    xs = np.array([1, 1, -1, -1, 1, 1, -1, -1], np.float32)
    ys = np.array([1, 1, 1, 1, -1, -1, -1, -1], np.float32)
    zs = np.array([1, -1, -1, 1, 1, -1, -1, 1], np.float32)
    c = np.zeros((8, _OUT_LANES), np.float32)
    # packed layout: cols 0..5 = [cx,cy,cz,dx,dy,dz], 6 = sigmoid, 7 = mask,
    #                8..15 = corner x, 16..23 = corner y, 24..31 = corner z
    for j in range(8):
        c[j, j] = 1.0
    c[0, 8:16] = 1.0
    c[3, 8:16] = xs * 0.5
    c[1, 16:24] = 1.0
    c[5, 16:24] = ys * 0.5
    c[2, 24:32] = 1.0
    c[4, 24:32] = zs * 0.5
    return jnp.asarray(c)


# ----------------------------------------------------------------------------
# Kernel 2: separate_into_batches as a chunked VMEM-resident row gather
# ----------------------------------------------------------------------------
def _gather_kernel(src_rows_ref, feat_ref, out_ref, *, r_chunk):
    base = pl.program_id(0) * r_chunk
    # Whole (P+1, 1, c_pad) feature slab is VMEM-resident; pick rows with
    # dynamic leading-dim indexing from the SMEM scalar-prefetch row map.
    for i in range(r_chunk):
        out_ref[i] = feat_ref[src_rows_ref[base + i]]


def _run_batch_gather(src_rows, feat_src, r_chunk):
    n_src, _, c_pad = feat_src.shape
    rpad = src_rows.shape[0]
    grid_spec = pltpu.PrefetchScalarGridSpec(
        num_scalar_prefetch=1,
        grid=(rpad // r_chunk,),
        in_specs=[pl.BlockSpec((n_src, 1, c_pad), lambda r, src: (0, 0, 0))],
        out_specs=pl.BlockSpec((r_chunk, 1, c_pad), lambda r, src: (r, 0, 0)),
    )
    return pl.pallas_call(
        functools.partial(_gather_kernel, r_chunk=r_chunk),
        out_shape=jax.ShapeDtypeStruct((rpad, 1, c_pad), jnp.float32),
        grid_spec=grid_spec,
        compiler_params=pltpu.CompilerParams(
            dimension_semantics=("parallel",),
            vmem_limit_bytes=32 * 1024 * 1024),
    )(src_rows, feat_src)


# ----------------------------------------------------------------------------
# Wrapper reproducing CapNet.forward post-PointGroup semantics
# ----------------------------------------------------------------------------
def capnet_postprocess(locs_float, proposal_feats, proposals_idx, proposals_offset,
                       proposal_scores, semantic_preds, batch_offsets,
                       batch_size, num_proposal, score_thre=0.09,
                       p_tile_max=32, m_tile_max=2048, r_chunk_max=64):
    P = int(proposals_offset.shape[0]) - 1
    M = int(proposals_idx.shape[0])
    C = int(proposal_feats.shape[1])

    p_tile = min(p_tile_max, _ceil_to(P, 8))
    ppad = _ceil_to(P, p_tile)
    m_tile = min(m_tile_max, _ceil_to(M, 128))
    mpad = _ceil_to(M, m_tile)

    # --- glue: gather point coordinates for all proposal members -------------
    pt_ids = proposals_idx[:, 1]
    gathered = locs_float[pt_ids]                                   # (M, 3)
    seg = (jnp.searchsorted(proposals_offset, jnp.arange(M, dtype=jnp.int32),
                            side="right") - 1).astype(jnp.int32)    # (M,)

    # Single coord-major slab: rows 0..2 = x/y/z, row 3 = bit-cast segment ids.
    seg_row = jnp.full((mpad,), -1, jnp.int32).at[:M].set(seg)
    locs_cm = jnp.zeros((8, mpad), jnp.float32)
    locs_cm = locs_cm.at[:3, :M].set(gathered.T.astype(jnp.float32))
    locs_cm = locs_cm.at[3, :].set(jax.lax.bitcast_convert_type(seg_row, jnp.float32))

    scores_col = jnp.zeros((ppad, 1), jnp.float32).at[:P, 0].set(
        proposal_scores.reshape(P).astype(jnp.float32))
    coeff = _build_corner_coeff()

    packed = _run_bbox_kernel(locs_cm, scores_col, coeff,
                              ppad, p_tile, m_tile, score_thre)     # (ppad, 128)

    bbox_parameters = packed[:P, 0:6]                               # (P, 6)
    scores_sig = packed[:P, 6]                                      # (P,)
    bbox_mask = packed[:P, 7]                                       # (P,)
    bbox_corners = jnp.stack([packed[:P, 8:16], packed[:P, 16:24],
                              packed[:P, 24:32]], axis=-1)          # (P, 8, 3)

    # --- glue: per-proposal semantic label (label of first member point) -----
    first_pts = proposals_idx[proposals_offset[:-1], 1]
    proposal_sems = semantic_preds[first_pts].astype(jnp.float32)   # (P,)

    # --- glue: batch id and within-batch slot (O(P*B), no P x P intermediate)
    batch_id = (jnp.searchsorted(batch_offsets, first_pts, side="right") - 1
                ).astype(jnp.int32)                                 # (P,)
    onehot = (batch_id[:, None] ==
              jnp.arange(batch_size, dtype=jnp.int32)[None, :]).astype(jnp.int32)
    cum = jnp.cumsum(onehot, axis=0)                                # (P, B)
    slot = jnp.take_along_axis(cum, batch_id[:, None], axis=1)[:, 0] - 1
    valid_slot = slot < num_proposal                                # truncation

    # --- per-proposal feature slab (f32, lane-padded to 128) ------------------
    Ctot = C + 24 + 6 + 1 + 1 + 1
    c_pad = _ceil_to(Ctot, 128)
    featmat = jnp.concatenate([
        proposal_feats.astype(jnp.float32),                         # C
        bbox_corners.reshape(P, 24),                                # 24
        bbox_parameters,                                            # 6
        scores_sig[:, None],                                        # 1
        bbox_mask[:, None],                                         # 1
        proposal_sems[:, None],                                     # 1
    ], axis=1)
    # Row P is the all-zero "trash" source row (fills empty dense slots).
    feat_src = jnp.zeros((P + 1, 1, c_pad), jnp.float32).at[:P, 0, :Ctot].set(featmat)

    # src_rows[r] = proposal feeding dense row r, or P (trash) when empty.
    R = batch_size * num_proposal
    r_chunk = min(r_chunk_max, _ceil_to(R, 8))
    rpad = _ceil_to(R, r_chunk)
    rows = batch_id * num_proposal + slot
    scatter_rows = jnp.where(valid_slot, rows, rpad)                # OOB -> dropped
    src_rows = jnp.full((rpad,), P, jnp.int32).at[scatter_rows].set(
        jnp.arange(P, dtype=jnp.int32), mode="drop")

    dense = _run_batch_gather(src_rows, feat_src, r_chunk)          # (rpad, 1, c_pad)
    dense = dense[:R, 0, :].reshape(batch_size, num_proposal, c_pad)

    out = {}
    out["bbox_feature"] = dense[..., :C]
    out["bbox_corner"] = dense[..., C:C + 24].reshape(batch_size, num_proposal, 8, 3)
    out["bbox_parameters"] = dense[..., C + 24:C + 30]
    out["bbox_scores"] = dense[..., C + 30]
    out["bbox_mask"] = dense[..., C + 31]
    out["bbox_sems"] = dense[..., C + 32]
    out["sem_cls"] = out["bbox_sems"]
    return out


# ----------------------------------------------------------------------------
if __name__ == "__main__":
    key = jax.random.PRNGKey(0)
    B = 2
    N_PER = 64
    N = B * N_PER
    C = 32
    NUM_PROPOSAL = 8       # CapNet num_proposal (MAX_PROPOSALS), small test value
    SCORE_THRE = 0.09

    k1, k2, k3 = jax.random.split(key, 3)
    locs_float = jax.random.normal(k1, (N, 3), jnp.float32)
    P = 6
    proposal_feats = jax.random.normal(k2, (P, C), jnp.float32)
    proposal_scores = jax.random.normal(k3, (P, 1), jnp.float32)

    # Proposals 0..2 live in batch 0 (points < 64), 3..5 in batch 1.
    sizes = [10, 8, 12, 6, 20, 9]
    starts = [0, 12, 25, 64, 75, 100]
    idx_rows = []
    sem_list = [0] * N
    for pid_, (s0, sz) in enumerate(zip(starts, sizes)):
        for j in range(sz):
            idx_rows.append((pid_, s0 + j))
            sem_list[s0 + j] = pid_ + 1
    proposals_idx = jnp.array(idx_rows, jnp.int32)                   # (M, 2)
    offs = [0]
    for sz in sizes:
        offs.append(offs[-1] + sz)
    proposals_offset = jnp.array(offs, jnp.int32)                    # (P+1,)
    semantic_preds = jnp.array(sem_list, jnp.int32)                  # (N,)
    batch_offsets = jnp.array([0, N_PER, N], jnp.int32)              # (B+1,)

    out = capnet_postprocess(locs_float, proposal_feats, proposals_idx,
                             proposals_offset, proposal_scores, semantic_preds,
                             batch_offsets, batch_size=B,
                             num_proposal=NUM_PROPOSAL, score_thre=SCORE_THRE)
    jax.block_until_ready(out)

    # --- sanity checks against a pure-JAX reference ---------------------------
    pc0 = locs_float[0:10]
    mn = jnp.min(pc0, axis=0)
    mx = jnp.max(pc0, axis=0)
    ref_params0 = jnp.concatenate([(mn + mx) * 0.5, mx - mn])
    assert jnp.allclose(out["bbox_parameters"][0, 0], ref_params0, atol=1e-5)
    # corner 0 of proposal 0: x = cx + dx/2, y = cy + dz/2, z = cz + dy/2
    ref_corner0 = jnp.array([ref_params0[0] + ref_params0[3] * 0.5,
                             ref_params0[1] + ref_params0[5] * 0.5,
                             ref_params0[2] + ref_params0[4] * 0.5])
    assert jnp.allclose(out["bbox_corner"][0, 0, 0], ref_corner0, atol=1e-5)
    # proposal 3 is the first proposal of batch 1 (features are bit-exact)
    assert jnp.allclose(out["bbox_feature"][1, 0], proposal_feats[3], atol=1e-6)
    assert jnp.allclose(out["bbox_scores"][0, 0],
                        jax.nn.sigmoid(proposal_scores[0, 0]), atol=1e-5)
    assert jnp.allclose(out["bbox_sems"][1, 0], 4.0, atol=1e-5)
    # padded proposal slots are zero-filled, as in separate_into_batches
    assert jnp.allclose(out["bbox_feature"][0, 3:], 0.0)
    assert jnp.allclose(out["bbox_scores"][0, 3:], 0.0)

    print("KERNEL_OK")
</pallas_src>

<mosaic_0001>
module attributes {stable_mosaic.version = 11 : i64} {
  func.func @_bbox_kernel(%arg0: i32, %arg1: i32, %arg2: memref<8x128xf32, #tpu.memory_space<vmem>>, %arg3: memref<8x1xf32, #tpu.memory_space<vmem>>, %arg4: memref<8x128xf32, #tpu.memory_space<vmem>>, %arg5: memref<8x128xf32, #tpu.memory_space<vmem>>, %arg6: memref<8x128xf32, #tpu.memory_space<vmem>>, %arg7: memref<8x128xf32, #tpu.memory_space<vmem>>, %arg8: memref<8x128xf32, #tpu.memory_space<vmem>>, %arg9: memref<8x128xf32, #tpu.memory_space<vmem>>, %arg10: memref<8x128xf32, #tpu.memory_space<vmem>>, %arg11: memref<8x128xf32, #tpu.memory_space<vmem>>) attributes {dimension_semantics = [#tpu.dimension_semantics<parallel>, #tpu.dimension_semantics<arbitrary>], iteration_bounds = array<i64: 1, 1>, scalar_prefetch = 0 : i64, scratch_operands = 6 : i64, tpu.core_type = #tpu.core_type<tc>, window_params = [{transform_indices = @transform_0, window_bounds = array<i64: 8, 128>}, {transform_indices = @transform_1, window_bounds = array<i64: 8, 1>}, {pipeline_mode = #tpu.pipeline_mode<synchronous>, transform_indices = @transform_2, window_bounds = array<i64: 8, 128>}, {transform_indices = @transform_3, window_bounds = array<i64: 8, 128>}]} {
    %c0_i32 = arith.constant 0 : i32
    %0 = arith.cmpi eq, %arg1, %c0_i32 : i32
    %1 = arith.extui %0 : i1 to i32
    %c0_i32_0 = arith.constant 0 : i32
    %2 = arith.cmpi ne, %1, %c0_i32_0 : i32
    scf.if %2 {
      %cst_36 = arith.constant 1.000000e+30 : f32
      %60 = vector.broadcast %cst_36 : f32 to vector<8x128xf32>
      %c0_37 = arith.constant 0 : index
      %c0_38 = arith.constant 0 : index
      %61 = vector.load %arg6[%c0_37, %c0_38] : memref<8x128xf32, #tpu.memory_space<vmem>>, vector<8x128xf32>
      tpu.vector_store %arg6[%c0_37, %c0_38], %60 {strides = array<i32>} : memref<8x128xf32, #tpu.memory_space<vmem>>, vector<8x128xf32>,
      %c0_39 = arith.constant 0 : index
      %c0_40 = arith.constant 0 : index
      %62 = vector.load %arg8[%c0_39, %c0_40] : memref<8x128xf32, #tpu.memory_space<vmem>>, vector<8x128xf32>
      tpu.vector_store %arg8[%c0_39, %c0_40], %60 {strides = array<i32>} : memref<8x128xf32, #tpu.memory_space<vmem>>, vector<8x128xf32>,
      %c0_41 = arith.constant 0 : index
      %c0_42 = arith.constant 0 : index
      %63 = vector.load %arg10[%c0_41, %c0_42] : memref<8x128xf32, #tpu.memory_space<vmem>>, vector<8x128xf32>
      tpu.vector_store %arg10[%c0_41, %c0_42], %60 {strides = array<i32>} : memref<8x128xf32, #tpu.memory_space<vmem>>, vector<8x128xf32>,
      %cst_43 = arith.constant 0.000000e+00 : f32
      %64 = vector.broadcast %cst_43 : f32 to vector<8x128xf32>
      %65 = arith.subf %64, %60 : vector<8x128xf32>
      %c0_44 = arith.constant 0 : index
      %c0_45 = arith.constant 0 : index
      %66 = vector.load %arg7[%c0_44, %c0_45] : memref<8x128xf32, #tpu.memory_space<vmem>>, vector<8x128xf32>
      tpu.vector_store %arg7[%c0_44, %c0_45], %65 {strides = array<i32>} : memref<8x128xf32, #tpu.memory_space<vmem>>, vector<8x128xf32>,
      %cst_46 = arith.constant 0.000000e+00 : f32
      %67 = vector.broadcast %cst_46 : f32 to vector<8x128xf32>
      %68 = arith.subf %67, %60 : vector<8x128xf32>
      %c0_47 = arith.constant 0 : index
      %c0_48 = arith.constant 0 : index
      %69 = vector.load %arg9[%c0_47, %c0_48] : memref<8x128xf32, #tpu.memory_space<vmem>>, vector<8x128xf32>
      tpu.vector_store %arg9[%c0_47, %c0_48], %68 {strides = array<i32>} : memref<8x128xf32, #tpu.memory_space<vmem>>, vector<8x128xf32>,
      %cst_49 = arith.constant 0.000000e+00 : f32
      %70 = vector.broadcast %cst_49 : f32 to vector<8x128xf32>
      %71 = arith.subf %70, %60 : vector<8x128xf32>
      %c0_50 = arith.constant 0 : index
      %c0_51 = arith.constant 0 : index
      %72 = vector.load %arg11[%c0_50, %c0_51] : memref<8x128xf32, #tpu.memory_space<vmem>>, vector<8x128xf32>
      tpu.vector_store %arg11[%c0_50, %c0_51], %71 {strides = array<i32>} : memref<8x128xf32, #tpu.memory_space<vmem>>, vector<8x128xf32>,
    } else {
    }
    %c8_i32 = arith.constant 8 : i32
    %3 = arith.muli %arg0, %c8_i32 : i32
    %4 = tpu.iota {dimensions = array<i32: 0>} : vector<8x1xi32>
    %5 = vector.broadcast %3 : i32 to vector<8x1xi32>
    %6 = arith.addi %5, %4 : vector<8x1xi32>
    %c0 = arith.constant 0 : index
    %c0_1 = arith.constant 0 : index
    %7 = vector.load %arg6[%c0, %c0_1] : memref<8x128xf32, #tpu.memory_space<vmem>>, vector<8x128xf32>
    %c0_2 = arith.constant 0 : index
    %c0_3 = arith.constant 0 : index
    %8 = vector.load %arg7[%c0_2, %c0_3] : memref<8x128xf32, #tpu.memory_space<vmem>>, vector<8x128xf32>
    %c0_4 = arith.constant 0 : index
    %c0_5 = arith.constant 0 : index
    %9 = vector.load %arg8[%c0_4, %c0_5] : memref<8x128xf32, #tpu.memory_space<vmem>>, vector<8x128xf32>
    %c0_6 = arith.constant 0 : index
    %c0_7 = arith.constant 0 : index
    %10 = vector.load %arg9[%c0_6, %c0_7] : memref<8x128xf32, #tpu.memory_space<vmem>>, vector<8x128xf32>
    %c0_8 = arith.constant 0 : index
    %c0_9 = arith.constant 0 : index
    %11 = vector.load %arg10[%c0_8, %c0_9] : memref<8x128xf32, #tpu.memory_space<vmem>>, vector<8x128xf32>
    %c0_10 = arith.constant 0 : index
    %c0_11 = arith.constant 0 : index
    %12 = vector.load %arg11[%c0_10, %c0_11] : memref<8x128xf32, #tpu.memory_space<vmem>>, vector<8x128xf32>
    %c3 = arith.constant 3 : index
    %c0_12 = arith.constant 0 : index
    %13 = vector.load %arg2[%c3, %c0_12] : memref<8x128xf32, #tpu.memory_space<vmem>>, vector<1x128xf32>
    %14 = tpu.bitcast %13 : vector<1x128xf32> -> vector<1x128xi32>
    %15 = vector.broadcast %14 : vector<1x128xi32> to vector<8x128xi32>
    %16 = vector.broadcast %6 : vector<8x1xi32> to vector<8x128xi32>
    %17 = arith.cmpi eq, %15, %16 : vector<8x128xi32>
    %c0_13 = arith.constant 0 : index
    %c0_14 = arith.constant 0 : index
    %18 = vector.load %arg2[%c0_13, %c0_14] : memref<8x128xf32, #tpu.memory_space<vmem>>, vector<1x128xf32>
    %c1 = arith.constant 1 : index
    %c0_15 = arith.constant 0 : index
    %19 = vector.load %arg2[%c1, %c0_15] : memref<8x128xf32, #tpu.memory_space<vmem>>, vector<1x128xf32>
    %c2 = arith.constant 2 : index
    %c0_16 = arith.constant 0 : index
    %20 = vector.load %arg2[%c2, %c0_16] : memref<8x128xf32, #tpu.memory_space<vmem>>, vector<1x128xf32>
    %cst = arith.constant 1.000000e+30 : f32
    %21 = vector.shape_cast %18 : vector<1x128xf32> to vector<1x128xf32>
    %22 = vector.broadcast %21 : vector<1x128xf32> to vector<8x128xf32>
    %23 = vector.broadcast %cst : f32 to vector<8x128xf32>
    %24 = arith.select %17, %22, %23 : vector<8x128xi1>, vector<8x128xf32>
    %25 = arith.minimumf %7, %24 : vector<8x128xf32>
    %cst_17 = arith.constant -1.000000e+30 : f32
    %26 = vector.shape_cast %18 : vector<1x128xf32> to vector<1x128xf32>
    %27 = vector.broadcast %26 : vector<1x128xf32> to vector<8x128xf32>
    %28 = vector.broadcast %cst_17 : f32 to vector<8x128xf32>
    %29 = arith.select %17, %27, %28 : vector<8x128xi1>, vector<8x128xf32>
    %30 = arith.maximumf %8, %29 : vector<8x128xf32>
    %cst_18 = arith.constant 1.000000e+30 : f32
    %31 = vector.shape_cast %19 : vector<1x128xf32> to vector<1x128xf32>
    %32 = vector.broadcast %31 : vector<1x128xf32> to vector<8x128xf32>
    %33 = vector.broadcast %cst_18 : f32 to vector<8x128xf32>
    %34 = arith.select %17, %32, %33 : vector<8x128xi1>, vector<8x128xf32>
    %35 = arith.minimumf %9, %34 : vector<8x128xf32>
    %cst_19 = arith.constant -1.000000e+30 : f32
    %36 = vector.shape_cast %19 : vector<1x128xf32> to vector<1x128xf32>
    %37 = vector.broadcast %36 : vector<1x128xf32> to vector<8x128xf32>
    %38 = vector.broadcast %cst_19 : f32 to vector<8x128xf32>
    %39 = arith.select %17, %37, %38 : vector<8x128xi1>, vector<8x128xf32>
    %40 = arith.maximumf %10, %39 : vector<8x128xf32>
    %cst_20 = arith.constant 1.000000e+30 : f32
    %41 = vector.shape_cast %20 : vector<1x128xf32> to vector<1x128xf32>
    %42 = vector.broadcast %41 : vector<1x128xf32> to vector<8x128xf32>
    %43 = vector.broadcast %cst_20 : f32 to vector<8x128xf32>
    %44 = arith.select %17, %42, %43 : vector<8x128xi1>, vector<8x128xf32>
    %45 = arith.minimumf %11, %44 : vector<8x128xf32>
    %cst_21 = arith.constant -1.000000e+30 : f32
    %46 = vector.shape_cast %20 : vector<1x128xf32> to vector<1x128xf32>
    %47 = vector.broadcast %46 : vector<1x128xf32> to vector<8x128xf32>
    %48 = vector.broadcast %cst_21 : f32 to vector<8x128xf32>
    %49 = arith.select %17, %47, %48 : vector<8x128xi1>, vector<8x128xf32>
    %50 = arith.maximumf %12, %49 : vector<8x128xf32>
    %c0_22 = arith.constant 0 : index
    %c0_23 = arith.constant 0 : index
    %51 = vector.load %arg6[%c0_22, %c0_23] : memref<8x128xf32, #tpu.memory_space<vmem>>, vector<8x128xf32>
    tpu.vector_store %arg6[%c0_22, %c0_23], %25 {strides = array<i32>} : memref<8x128xf32, #tpu.memory_space<vmem>>, vector<8x128xf32>,
    %c0_24 = arith.constant 0 : index
    %c0_25 = arith.constant 0 : index
    %52 = vector.load %arg7[%c0_24, %c0_25] : memref<8x128xf32, #tpu.memory_space<vmem>>, vector<8x128xf32>
    tpu.vector_store %arg7[%c0_24, %c0_25], %30 {strides = array<i32>} : memref<8x128xf32, #tpu.memory_space<vmem>>, vector<8x128xf32>,
    %c0_26 = arith.constant 0 : index
    %c0_27 = arith.constant 0 : index
    %53 = vector.load %arg8[%c0_26, %c0_27] : memref<8x128xf32, #tpu.memory_space<vmem>>, vector<8x128xf32>
    tpu.vector_store %arg8[%c0_26, %c0_27], %35 {strides = array<i32>} : memref<8x128xf32, #tpu.memory_space<vmem>>, vector<8x128xf32>,
    %c0_28 = arith.constant 0 : index
    %c0_29 = arith.constant 0 : index
    %54 = vector.load %arg9[%c0_28, %c0_29] : memref<8x128xf32, #tpu.memory_space<vmem>>, vector<8x128xf32>
    tpu.vector_store %arg9[%c0_28, %c0_29], %40 {strides = array<i32>} : memref<8x128xf32, #tpu.memory_space<vmem>>, vector<8x128xf32>,
    %c0_30 = arith.constant 0 : index
    %c0_31 = arith.constant 0 : index
    %55 = vector.load %arg10[%c0_30, %c0_31] : memref<8x128xf32, #tpu.memory_space<vmem>>, vector<8x128xf32>
    tpu.vector_store %arg10[%c0_30, %c0_31], %45 {strides = array<i32>} : memref<8x128xf32, #tpu.memory_space<vmem>>, vector<8x128xf32>,
    %c0_32 = arith.constant 0 : index
    %c0_33 = arith.constant 0 : index
    %56 = vector.load %arg11[%c0_32, %c0_33] : memref<8x128xf32, #tpu.memory_space<vmem>>, vector<8x128xf32>
    tpu.vector_store %arg11[%c0_32, %c0_33], %50 {strides = array<i32>} : memref<8x128xf32, #tpu.memory_space<vmem>>, vector<8x128xf32>,
    %c0_i32_34 = arith.constant 0 : i32
    %57 = arith.cmpi eq, %arg1, %c0_i32_34 : i32
    %58 = arith.extui %57 : i1 to i32
    %c0_i32_35 = arith.constant 0 : i32
    %59 = arith.cmpi ne, %58, %c0_i32_35 : i32
    scf.if %59 {
      %cst_36 = arith.constant dense<0x7F800000> : vector<8xf32>
      %60 = vector.multi_reduction <minimumf>, %25, %cst_36 [1] : vector<8x128xf32> to vector<8xf32>
      %61 = vector.shape_cast %60 : vector<8xf32> to vector<8x1xf32>
      %cst_37 = arith.constant dense<0xFF800000> : vector<8xf32>
      %62 = vector.multi_reduction <maximumf>, %30, %cst_37 [1] : vector<8x128xf32> to vector<8xf32>
      %63 = vector.shape_cast %62 : vector<8xf32> to vector<8x1xf32>
      %cst_38 = arith.constant dense<0x7F800000> : vector<8xf32>
      %64 = vector.multi_reduction <minimumf>, %35, %cst_38 [1] : vector<8x128xf32> to vector<8xf32>
      %65 = vector.shape_cast %64 : vector<8xf32> to vector<8x1xf32>
      %cst_39 = arith.constant dense<0xFF800000> : vector<8xf32>
      %66 = vector.multi_reduction <maximumf>, %40, %cst_39 [1] : vector<8x128xf32> to vector<8xf32>
      %67 = vector.shape_cast %66 : vector<8xf32> to vector<8x1xf32>
      %cst_40 = arith.constant dense<0x7F800000> : vector<8xf32>
      %68 = vector.multi_reduction <minimumf>, %45, %cst_40 [1] : vector<8x128xf32> to vector<8xf32>
      %69 = vector.shape_cast %68 : vector<8xf32> to vector<8x1xf32>
      %cst_41 = arith.constant dense<0xFF800000> : vector<8xf32>
      %70 = vector.multi_reduction <maximumf>, %50, %cst_41 [1] : vector<8x128xf32> to vector<8xf32>
      %71 = vector.shape_cast %70 : vector<8xf32> to vector<8x1xf32>
      %cst_42 = arith.constant 5.000000e+29 : f32
      %72 = vector.broadcast %cst_42 : f32 to vector<8x1xf32>
      %73 = arith.cmpf olt, %61, %72 : vector<8x1xf32>
      %74 = arith.addf %61, %63 : vector<8x1xf32>
      %cst_43 = arith.constant 5.000000e-01 : f32
      %75 = vector.broadcast %cst_43 : f32 to vector<8x1xf32>
      %76 = arith.mulf %74, %75 : vector<8x1xf32>
      %cst_44 = arith.constant 0.000000e+00 : f32
      %77 = vector.broadcast %cst_44 : f32 to vector<8x1xf32>
      %78 = arith.select %73, %76, %77 : vector<8x1xi1>, vector<8x1xf32>
      %79 = arith.addf %65, %67 : vector<8x1xf32>
      %cst_45 = arith.constant 5.000000e-01 : f32
      %80 = vector.broadcast %cst_45 : f32 to vector<8x1xf32>
      %81 = arith.mulf %79, %80 : vector<8x1xf32>
      %cst_46 = arith.constant 0.000000e+00 : f32
      %82 = vector.broadcast %cst_46 : f32 to vector<8x1xf32>
      %83 = arith.select %73, %81, %82 : vector<8x1xi1>, vector<8x1xf32>
      %84 = arith.addf %69, %71 : vector<8x1xf32>
      %cst_47 = arith.constant 5.000000e-01 : f32
      %85 = vector.broadcast %cst_47 : f32 to vector<8x1xf32>
      %86 = arith.mulf %84, %85 : vector<8x1xf32>
      %cst_48 = arith.constant 0.000000e+00 : f32
      %87 = vector.broadcast %cst_48 : f32 to vector<8x1xf32>
      %88 = arith.select %73, %86, %87 : vector<8x1xi1>, vector<8x1xf32>
      %89 = arith.subf %63, %61 : vector<8x1xf32>
      %cst_49 = arith.constant 0.000000e+00 : f32
      %90 = vector.broadcast %cst_49 : f32 to vector<8x1xf32>
      %91 = arith.select %73, %89, %90 : vector<8x1xi1>, vector<8x1xf32>
      %92 = arith.subf %67, %65 : vector<8x1xf32>
      %cst_50 = arith.constant 0.000000e+00 : f32
      %93 = vector.broadcast %cst_50 : f32 to vector<8x1xf32>
      %94 = arith.select %73, %92, %93 : vector<8x1xi1>, vector<8x1xf32>
      %95 = arith.subf %71, %69 : vector<8x1xf32>
      %cst_51 = arith.constant 0.000000e+00 : f32
      %96 = vector.broadcast %cst_51 : f32 to vector<8x1xf32>
      %97 = arith.select %73, %95, %96 : vector<8x1xi1>, vector<8x1xf32>
      %c0_52 = arith.constant 0 : index
      %c0_53 = arith.constant 0 : index
      %98 = vector.load %arg3[%c0_52, %c0_53] : memref<8x1xf32, #tpu.memory_space<vmem>>, vector<8x1xf32>
      %99 = arith.negf %98 : vector<8x1xf32>
      %100 = math.exp %99 : vector<8x1xf32>
      %cst_54 = arith.constant 1.000000e+00 : f32
      %101 = vector.broadcast %cst_54 : f32 to vector<8x1xf32>
      %102 = arith.addf %101, %100 : vector<8x1xf32>
      %103 = arith.divf %101, %102 : vector<8x1xf32>
      %cst_55 = arith.constant 9.000000e-02 : f32
      %104 = vector.broadcast %cst_55 : f32 to vector<8x1xf32>
      %105 = arith.cmpf ogt, %103, %104 : vector<8x1xf32>
      %106 = arith.extui %105 : vector<8x1xi1> to vector<8x1xi32>
      %107 = arith.sitofp %106 : vector<8x1xi32> to vector<8x1xf32>
      %c0_56 = arith.constant 0 : index
      %c0_57 = arith.constant 0 : index
      %108 = vector.load %arg4[%c0_56, %c0_57] : memref<8x128xf32, #tpu.memory_space<vmem>>, vector<8x128xf32>
      %109 = vector.extract_strided_slice %108 {offsets = [0, 0], sizes = [1, 128], strides = [1, 1]} : vector<8x128xf32> to vector<1x128xf32>
      %110 = vector.broadcast %78 : vector<8x1xf32> to vector<8x128xf32>
      %111 = vector.broadcast %109 : vector<1x128xf32> to vector<8x128xf32>
      %112 = arith.mulf %110, %111 : vector<8x128xf32>
      %113 = vector.extract_strided_slice %108 {offsets = [1, 0], sizes = [1, 128], strides = [1, 1]} : vector<8x128xf32> to vector<1x128xf32>
      %114 = vector.broadcast %83 : vector<8x1xf32> to vector<8x128xf32>
      %115 = vector.broadcast %113 : vector<1x128xf32> to vector<8x128xf32>
      %116 = arith.mulf %114, %115 : vector<8x128xf32>
      %117 = arith.addf %112, %116 : vector<8x128xf32>
      %118 = vector.extract_strided_slice %108 {offsets = [2, 0], sizes = [1, 128], strides = [1, 1]} : vector<8x128xf32> to vector<1x128xf32>
      %119 = vector.broadcast %88 : vector<8x1xf32> to vector<8x128xf32>
      %120 = vector.broadcast %118 : vector<1x128xf32> to vector<8x128xf32>
      %121 = arith.mulf %119, %120 : vector<8x128xf32>
      %122 = arith.addf %117, %121 : vector<8x128xf32>
      %123 = vector.extract_strided_slice %108 {offsets = [3, 0], sizes = [1, 128], strides = [1, 1]} : vector<8x128xf32> to vector<1x128xf32>
      %124 = vector.broadcast %91 : vector<8x1xf32> to vector<8x128xf32>
      %125 = vector.broadcast %123 : vector<1x128xf32> to vector<8x128xf32>
      %126 = arith.mulf %124, %125 : vector<8x128xf32>
      %127 = arith.addf %122, %126 : vector<8x128xf32>
      %128 = vector.extract_strided_slice %108 {offsets = [4, 0], sizes = [1, 128], strides = [1, 1]} : vector<8x128xf32> to vector<1x128xf32>
      %129 = vector.broadcast %94 : vector<8x1xf32> to vector<8x128xf32>
      %130 = vector.broadcast %128 : vector<1x128xf32> to vector<8x128xf32>
      %131 = arith.mulf %129, %130 : vector<8x128xf32>
      %132 = arith.addf %127, %131 : vector<8x128xf32>
      %133 = vector.extract_strided_slice %108 {offsets = [5, 0], sizes = [1, 128], strides = [1, 1]} : vector<8x128xf32> to vector<1x128xf32>
      %134 = vector.broadcast %97 : vector<8x1xf32> to vector<8x128xf32>
      %135 = vector.broadcast %133 : vector<1x128xf32> to vector<8x128xf32>
      %136 = arith.mulf %134, %135 : vector<8x128xf32>
      %137 = arith.addf %132, %136 : vector<8x128xf32>
      %138 = vector.extract_strided_slice %108 {offsets = [6, 0], sizes = [1, 128], strides = [1, 1]} : vector<8x128xf32> to vector<1x128xf32>
      %139 = vector.broadcast %103 : vector<8x1xf32> to vector<8x128xf32>
      %140 = vector.broadcast %138 : vector<1x128xf32> to vector<8x128xf32>
      %141 = arith.mulf %139, %140 : vector<8x128xf32>
      %142 = arith.addf %137, %141 : vector<8x128xf32>
      %143 = vector.extract_strided_slice %108 {offsets = [7, 0], sizes = [1, 128], strides = [1, 1]} : vector<8x128xf32> to vector<1x128xf32>
      %144 = vector.broadcast %107 : vector<8x1xf32> to vector<8x128xf32>
      %145 = vector.broadcast %143 : vector<1x128xf32> to vector<8x128xf32>
      %146 = arith.mulf %144, %145 : vector<8x128xf32>
      %147 = arith.addf %142, %146 : vector<8x128xf32>
      %c0_58 = arith.constant 0 : index
      %c0_59 = arith.constant 0 : index
      %148 = vector.load %arg5[%c0_58, %c0_59] : memref<8x128xf32, #tpu.memory_space<vmem>>, vector<8x128xf32>
      tpu.vector_store %arg5[%c0_58, %c0_59], %147 {strides = array<i32>} : memref<8x128xf32, #tpu.memory_space<vmem>>, vector<8x128xf32>,
    } else {
    }
    return
  }
  func.func @transform_0(%arg0: i32, %arg1: i32) -> (i32, i32) {
    %c0_i32 = arith.constant 0 : i32
    %c0_i32_0 = arith.constant 0 : i32
    return %c0_i32, %arg1 : i32, i32
  }
  func.func @transform_1(%arg0: i32, %arg1: i32) -> (i32, i32) {
    %c0_i32 = arith.constant 0 : i32
    %c0_i32_0 = arith.constant 0 : i32
    return %arg0, %c0_i32 : i32, i32
  }
  func.func @transform_2(%arg0: i32, %arg1: i32) -> (i32, i32) {
    %c0_i32 = arith.constant 0 : i32
    %c0_i32_0 = arith.constant 0 : i32
    %c0_i32_1 = arith.constant 0 : i32
    return %c0_i32, %c0_i32_0 : i32, i32
  }
  func.func @transform_3(%arg0: i32, %arg1: i32) -> (i32, i32) {
    %c0_i32 = arith.constant 0 : i32
    %c0_i32_0 = arith.constant 0 : i32
    return %arg0, %c0_i32 : i32, i32
  }
}

</mosaic_0001>

<bundles_post_ra>
// kernel: tpu_custom_call.1
= control target key start
LH: loop header
LB: loop body
LE: loop exit
PB: predicated region body
PF: predicated region fallthrough
CT: control target
= control target key end

     0   :  { %8 = vsyncpa [#allocation9], 0  ;;  %s341_s0 = inlined_call_operand.vmem [shape: f32[8,128], index: 0, kind: input, shape index: {}]   ;;  %s342_s1 = inlined_call_operand.vmem [shape: f32[8,1], index: 1, kind: input, shape index: {}]   ;;  %s343_s2 = inlined_call_operand.hbm [shape: f32[8,128], index: 2, kind: input, shape index: {}]   ;;  %s344_s3 = inlined_call_operand.hbm [shape: f32[8,128], index: 3, kind: output, shape index: {}]  }
   0x1   :  { %9 = vsyncpa [#allocation10], 0  ;;  %s263_s12 = smov [#allocation8]  }
   0x2   :  { %s20_s13 = sshll.u32 %s263_s12, 4  ;;  %s21_s13 = int_to_ptr.vmem [resolvable:$true] %s20_s13 }
   0x3   :  { %s227_s14 = scalar_lea.vmem %s21_s13, 128  ;;  %p232_p1 = scmp.lt.s32.totalorder %s21_s13, %s21_s13 }
   0x4   :  { %p228_p0 = scmp.ne.s32.totalorder %s21_s13, %s227_s14  ;;  %p233_p2 = scmp.lt.s32.totalorder %s227_s14, %s227_s14 }
   0x6   :  { %p234_p3 = por %p233_p2, %p232_p1 }
   0x8   :  { %p235_p4 = pnand %p234_p3, %p228_p0 }
   0xa   :  { %238 = shalt.err (!%p235_p4)
}
   0xb   :  { %23 = dma.hbm_to_vmem [thread:$0]  %s343_s2, 128, %s21_s13, [#allocation9]  }
   0xc   :  { %259 = dma.done.wait [#allocation9], 128  }
   0xd   :  { %260 = vsyncadd [#allocation9], 4294967168  ;;  %v38_v0 = vlaneseq  ;;  %v264_v1 = vmov 0   ;;  %v203_v3 = vld [vmem:[%s341_s0 + $0x3] ss:$0 sm:$0xff]  ;;  %v265_v25 = vmov 0.0  }
   0xe   :  { %213 = vset.pattern.permute.xlu0 %v264_v1  ;;  %214 = vset.pattern.permute.xlu1 %v264_v1  ;;  %v205_v4 = vld [vmem:[%s341_s0 + $0x1] ss:$0 sm:$0xff]  ;;  %v204_v5 = vld [vmem:[%s341_s0] ss:$0 sm:$0xff]  ;;  %v206_v7 = vld [vmem:[%s341_s0 + $0x2] ss:$0 sm:$0xff] }
   0xf   :  { %v290_v2 = vshrl.u32 %v38_v0, 7  ;;  %v119_v13 = vld [vmem:[%s342_s1] sm:$0xff]  ;;  %s266_s0 = smov [#allocation11]  }
  0x10   :  { %v207_v19 = vmul.f32 -1.442695, %v119_v13  ;;  %v129_v33 = vld [vmem:[#allocation8] sm:$0xff]  ;;  %s194_s1 = sshll.u32 %s266_s0, 4  ;;  %s195_s1 = int_to_ptr.vmem [resolvable:$true] %s194_s1 }
  0x11   :  { %vm302_vm0 = vcmp.eq.s32.totalorder %v203_v3, %v290_v2  ;;  %v137_v29 = vsub.s32 1, %v290_v2  ;;  %v132_v30 = vsub.s32 0, %v290_v2  ;;  %v143_v38 = vsub.s32 2, %v290_v2  ;;  %s239_s26 = scalar_lea.vmem %s195_s1, 128  ;;  %p244_p6 = scmp.lt.s32.totalorder %s195_s1, %s195_s1 }
  0x12   :  { %v70_v8 = vsel %vm302_vm0, %v205_v4, 1e+30  ;;  %v62_v9 = vsel %vm302_vm0, %v204_v5, 1e+30  ;;  %v72_v10 = vsel %vm302_vm0, %v205_v4, -1e+30  ;;  %215 = vpow2.f32 %v207_v19  ;;  %p240_p5 = scmp.ne.s32.totalorder %s195_s1, %s239_s26  ;;  %p245_p7 = scmp.lt.s32.totalorder %s239_s26, %s239_s26 }
  0x13   :  { %v71_v11 = vmin.f32 %v70_v8, 1e+30  ;;  %v63_v12 = vmin.f32 %v62_v9, 1e+30  ;;  %v64_v14 = vsel %vm302_vm0, %v204_v5, -1e+30  ;;  %v138_v36 = vrot.slane %v129_v33, %v137_v29 }
  0x14   :  { %v73_v15 = vmax.f32 %v72_v10, -1e+30  ;;  %v65_v16 = vmax.f32 %v64_v14, -1e+30  ;;  %v80_v17 = vsel %vm302_vm0, %v206_v7, -1e+30  ;;  %v133_v37 = vrot.slane %v129_v33, %v132_v30  ;;  %p246_p8 = por %p245_p7, %p244_p6 }
  0x15   :  { %95 = vmin.xlane.f32.xlu1 %v71_v11  ;;  %91 = vmin.xlane.f32.xlu0 %v63_v12  ;;  %v78_v18 = vsel %vm302_vm0, %v206_v7, 1e+30  ;;  %v81_v20 = vmax.f32 %v80_v17, -1e+30  ;;  %v149_v41 = vsub.s32 3, %v290_v2  ;;  %v155_v48 = vsub.s32 4, %v290_v2 }
  0x16   :  { %v79_v21 = vmin.f32 %v78_v18, 1e+30  ;;  %v144_v51 = vrot.slane %v129_v33, %v143_v38  ;;  %v161_v55 = vsub.s32 5, %v290_v2  ;;  %v172_v56 = vsub.s32 6, %v290_v2  ;;  %p247_p9 = pnand %p246_p8, %p240_p5 }
  0x17   :  { %v150_v54 = vrot.slane %v129_v33, %v149_v41  ;;  %v156_v60 = vrot.slane %v129_v33, %v155_v48  ;;  %v183_v63 = vsub.s32 7, %v290_v2 }
  0x18   :  { %v162_v3 = vrot.slane %v129_v33, %v161_v55  ;;  %v173_v5 = vrot.slane %v129_v33, %v172_v56 }
  0x19   :  { %97 = vmax.xlane.f32.xlu1 %v73_v15  ;;  %93 = vmax.xlane.f32.xlu0 %v65_v16  ;;  %v184_v9 = vrot.slane %v129_v33, %v183_v63 }
  0x1d   :  { %101 = vmax.xlane.f32.xlu1 %v81_v20  ;;  %99 = vmin.xlane.f32.xlu0 %v79_v21 }
  0x1f   :  { %v216_v22 = vpop.eup %215 }
  0x20   :  { %v123_v23 = vadd.f32 1.0, %v216_v22 }
  0x22   :  { %217 = vrcp.f32 %v123_v23 }
  0x2f   :  { %v218_v24 = vpop.eup %217 }
  0x30   :  { %vm126_vm1 = vcmp.gt.f32.partialorder %v218_v24, 0.09 }
  0x31   :  { %v208_v26 = vsel %vm126_vm1, 1.0, %v265_v25 }
  0x32   :  { %178 = vperm.xlu1 %214, %v208_v26  }
  0x33   :  { %167 = vperm.xlu0 %213, %v218_v24  }
  0x9e   :  { %v96_v27 = vpop.xlane.xlu1 %95  ;;  %v92_v28 = vpop.xlane.xlu0 %91 }
  0x9f   :  { %vm103_vm2 = vcmp.lt.f32.partialorder %v92_v28, 5e+29 }
  0xa2   :  { %v98_v31 = vpop.xlane.xlu1 %97  ;;  %v94_v32 = vpop.xlane.xlu0 %93 }
  0xa3   :  { %v107_v34 = vadd.f32 %v98_v31, %v96_v27  ;;  %v104_v35 = vadd.f32 %v94_v32, %v92_v28  ;;  %v113_v46 = vsub.f32 %v94_v32, %v92_v28  ;;  %v115_v52 = vsub.f32 %v98_v31, %v96_v27 }
  0xa5   :  { %v108_v39 = vmul.f32 0.5, %v107_v34  ;;  %v105_v40 = vmul.f32 0.5, %v104_v35  ;;  %v114_v57 = vsel %vm103_vm2, %v113_v46, 0.0  ;;  %v116_v0 = vsel %vm103_vm2, %v115_v52, 0.0 }
  0xa6   :  { %v102_v42 = vpop.xlane.xlu1 %101  ;;  %v100_v43 = vpop.xlane.xlu0 %99  ;;  %v151_v1 = vmul.f32 %v150_v54, %v114_v57  ;;  %v157_v7 = vmul.f32 %v156_v60, %v116_v0 }
  0xa7   :  { %v109_v44 = vsel %vm103_vm2, %v108_v39, 0.0  ;;  %v106_v45 = vsel %vm103_vm2, %v105_v40, 0.0  ;;  %v110_v47 = vadd.f32 %v102_v42, %v100_v43  ;;  %v117_v59 = vsub.f32 %v102_v42, %v100_v43 }
  0xa8   :  { %v139_v49 = vmul.f32 %v138_v36, %v109_v44  ;;  %v134_v50 = vmul.f32 %v133_v37, %v106_v45 }
  0xa9   :  { %v111_v53 = vmul.f32 0.5, %v110_v47  ;;  %v118_v6 = vsel %vm103_vm2, %v117_v59, 0.0 }
  0xaa   :  { %v140_v61 = vadd.f32 %v139_v49, %v134_v50  ;;  %v163_v11 = vmul.f32 %v162_v3, %v118_v6 }
  0xab   :  { %v112_v58 = vsel %vm103_vm2, %v111_v53, 0.0 }
  0xac   :  { %v145_v62 = vmul.f32 %v144_v51, %v112_v58 }
  0xad   :  { %v179_v14 = vpop.permute.xlu1 %178 }
  0xae   :  { %v146_v4 = vadd.f32 %v145_v62, %v140_v61  ;;  %v168_v10 = vpop.permute.xlu0 %167  ;;  %v185_v16 = vmul.f32 %v184_v9, %v179_v14 }
  0xaf   :  { %v174_v13 = vmul.f32 %v173_v5, %v168_v10 }
  0xb0   :  { %v152_v8 = vadd.f32 %v151_v1, %v146_v4 }
  0xb2   :  { %v158_v12 = vadd.f32 %v157_v7, %v152_v8 }
  0xb4   :  { %v164_v15 = vadd.f32 %v163_v11, %v158_v12 }
  0xb6   :  { %v175_v2 = vadd.f32 %v174_v13, %v164_v15 }
  0xb8   :  { %v186_v17 = vadd.f32 %v185_v16, %v175_v2 }
  0xba   :  { %187 = vst [vmem:[#allocation11] sm:$0xff] %v186_v17 }
  0xbb   :  { %250 = shalt.err (!%p247_p9)
}
  0xbc   :  { %197 = dma.vmem_to_hbm [thread:$0]  %s195_s1, 128, %s344_s3, [#allocation10]  }
  0xbd   :  { %261 = dma.done.wait [#allocation10], 128  }
  0xbe   :  { %262 = vsyncadd [#allocation10], 4294967168 }
  0xbf   :  { %201 = vsyncpa [#allocation9], 1 }
  0xc0   :  { %202 = vsyncpa [#allocation10], 1 }

</bundles_post_ra>
